<compile_context>
chip_gen: v7x
topology: tpu7x:2x2x1
jax: 0.10.0
libtpu: 0.0.40
codegen_flags: <defaults>
</compile_context>

<pallas_src>
import functools
import math

import jax
import jax.numpy as jnp
from jax import lax
from jax.experimental import pallas as pl
from jax.experimental.pallas import tpu as pltpu


def mult_noise_kernel(seed_ref, x_ref, o_ref, *, alpha):
    """out = x + (1 - alpha) * sqrt(x) * N(0, 1), elementwise over one tile."""
    br, lane = x_ref.shape            # static block shape
    half = lane // 2                  # lane in {256, 512, 1024} -> half % 128 == 0

    # ---- global pair counter (tiling-invariant noise stream) -------------
    row0 = pl.program_id(0) * br
    rows = lax.broadcasted_iota(jnp.int32, (br, half), 0) + row0
    cols = lax.broadcasted_iota(jnp.int32, (br, half), 1)
    pair = rows * jnp.int32(half) + cols

    # ---- one lowbias32-style hash per pair, in uint32 (logical shifts) ---
    h = pltpu.bitcast(pair ^ seed_ref[0], jnp.uint32)
    h = h ^ (h >> 16)
    h = h * jnp.uint32(0x21F0AAAD)
    h = h ^ (h >> 15)
    h = h * jnp.uint32(0x735A2D97)
    h = h ^ (h >> 15)

    # Split 32 hash bits into two 16-bit uniforms (plenty for a noise layer).
    hi = pltpu.bitcast(h >> 16, jnp.int32)                    # [0, 65535]
    lo = pltpu.bitcast(h & jnp.uint32(0xFFFF), jnp.int32)     # [0, 65535]
    inv16 = jnp.float32(1.0 / 65536.0)
    u1 = (hi.astype(jnp.float32) + jnp.float32(1.0)) * inv16  # (0, 1]
    u2 = lo.astype(jnp.float32) * inv16                       # [0, 1)

    # ---- Box-Muller: scale folded into the radius; sin -> sign * sqrt(1-c^2)
    r = jnp.float32(1.0 - alpha) * jnp.sqrt(jnp.float32(-2.0) * jnp.log(u1))
    c = jnp.cos(jnp.float32(2.0 * math.pi) * u2)
    s_abs = jnp.sqrt(jnp.maximum(jnp.float32(1.0) - c * c, jnp.float32(0.0)))
    s = jnp.where(u2 < jnp.float32(0.5), s_abs, -s_abs)       # exact sign of sin

    # ---- two independent half-width store paths (no full-width concat) ---
    xl = x_ref[:, :half].astype(jnp.float32)
    xr = x_ref[:, half:].astype(jnp.float32)
    o_ref[:, :half] = (xl + jnp.sqrt(xl) * (r * c)).astype(o_ref.dtype)
    o_ref[:, half:] = (xr + jnp.sqrt(xr) * (r * s)).astype(o_ref.dtype)


def _chip_config():
    kind = ""
    try:
        kind = jax.devices()[0].device_kind.lower()
    except Exception:
        pass
    if "v6" in kind:
        # v6e: 128 MiB physical VMEM; f32 path is mem-bound -> bigger tiles.
        return {"tile_elems": 1024 * 1024, "vmem_limit": 64 << 20, "is_v7x": False}
    if "v7" in kind or "tpu7" in kind:
        # v7x: only 64 MiB physical VMEM -> keep tiles modest.
        return {"tile_elems": 512 * 1024, "vmem_limit": 32 << 20, "is_v7x": True}
    # v5e / unknown: modest tiles, explicit (safe) scoped-VMEM limit.
    return {"tile_elems": 512 * 1024, "vmem_limit": 32 << 20, "is_v7x": False}


def _dim_semantics(num_blocks, is_v7x):
    if is_v7x and num_blocks >= 2:
        try:
            return (pltpu.CORE_PARALLEL,)   # split row tiles across the 2 TCs
        except AttributeError:
            pass
    return ("parallel",)


def _host_salt(seed):
    """Cheap host-side seed scrambler so nearby seeds give unrelated streams."""
    s = (int(seed) * 0x9E3779B9 + 0x7F4A7C15) & 0xFFFFFFFF
    s ^= s >> 16
    s = (s * 0x85EBCA6B) & 0xFFFFFFFF
    s ^= s >> 13
    return s - (1 << 32) if s >= (1 << 31) else s   # as signed int32


def multiplicative_noise_layer(x, seed, alpha=0.9):
    """Pallas implementation of MultiplicativeNoiseLayer.forward.

    Args:
      x:     float array of any shape (e.g. NCHW, same as PyTorch).
      seed:  python int seeding the noise stream.
      alpha: noise mixing hyperparameter (default 0.9, as in the module).
    Returns:
      Array of the same shape and dtype as x.
    """
    orig_shape = x.shape
    dtype = x.dtype
    total = int(x.size)
    if total == 0:
        return x
    if total >= (1 << 32):
        # int32 pair counter would wrap -> noise streams would collide.
        raise ValueError("multiplicative_noise_layer: tensor too large for int32 noise counter")

    cfg = _chip_config()

    # Lane width: largest of {1024, 512, 256} dividing the element count so no
    # pad copy is needed and half the lane stays a multiple of 128.
    lane = None
    for cand in (1024, 512, 256):
        if total % cand == 0:
            lane = cand
            break
    if lane is None:
        lane = 256
    pad = (-total) % lane

    flat = x.reshape(-1)
    if pad:
        # TODO(synk): odd sizes take one pad copy; an in-kernel tail mask would avoid it.
        flat = jnp.pad(flat, (0, pad))
    rows = (total + pad) // lane
    x2 = flat.reshape(rows, lane)                 # lane-dense slab

    # Row tile: keep per-tile footprint ~constant regardless of lane width.
    br = max(8, cfg["tile_elems"] // lane)
    br = min(br, rows)
    num_blocks = int(pl.cdiv(rows, br))           # ragged last tile handled by Pallas

    kernel = functools.partial(mult_noise_kernel, alpha=float(alpha))
    seed_arr = jnp.asarray([_host_salt(seed)], dtype=jnp.int32)

    out2 = pl.pallas_call(
        kernel,
        out_shape=jax.ShapeDtypeStruct((rows, lane), dtype),
        grid_spec=pltpu.PrefetchScalarGridSpec(
            num_scalar_prefetch=1,                # seed scalar -> SMEM, once
            grid=(num_blocks,),
            in_specs=[pl.BlockSpec((br, lane), lambda i, seed: (i, 0))],
            out_specs=pl.BlockSpec((br, lane), lambda i, seed: (i, 0)),
        ),
        compiler_params=pltpu.CompilerParams(
            dimension_semantics=_dim_semantics(num_blocks, cfg["is_v7x"]),
            vmem_limit_bytes=cfg["vmem_limit"],
        ),
        cost_estimate=pl.CostEstimate(
            flops=30 * rows * lane,               # hash + Box-Muller VALU work
            transcendentals=3 * rows * lane,
            bytes_accessed=2 * rows * lane * jnp.dtype(dtype).itemsize,
        ),
    )(seed_arr, x2)

    out_flat = out2.reshape(-1)
    if pad:
        out_flat = out_flat[:total]
    return out_flat.reshape(orig_shape)


if __name__ == "__main__":
    key = jax.random.PRNGKey(0)
    # Non-negative intensity-like input, as sqrt(x) implies.
    x = jax.random.uniform(key, (2, 4, 16, 16), dtype=jnp.float32,
                           minval=0.25, maxval=1.0)

    out = multiplicative_noise_layer(x, seed=0, alpha=0.9)
    out = jax.block_until_ready(out)

    assert out.shape == x.shape and out.dtype == x.dtype
    assert bool(jnp.all(jnp.isfinite(out)))

    # With alpha=0.9: out = x + 0.1 * sqrt(x) * z,  z ~ N(0, 1).
    z = (out - x) / (0.1 * jnp.sqrt(x))
    assert float(jnp.max(jnp.abs(z))) > 0.5          # noise is actually present
    assert abs(float(jnp.mean(z))) < 0.2             # ~zero mean
    assert 0.8 < float(jnp.std(z)) < 1.2             # ~unit variance

    # Deterministic per seed; different seeds give different noise.
    out_same = multiplicative_noise_layer(x, seed=0, alpha=0.9)
    assert bool(jnp.all(out == out_same))
    out_diff = multiplicative_noise_layer(x, seed=1, alpha=0.9)
    assert not bool(jnp.all(out == out_diff))

    print("KERNEL_OK")
</pallas_src>

<mosaic_0001>
module attributes {stable_mosaic.version = 11 : i64} {
  func.func @mult_noise_kernel(%arg0: i32, %arg1: memref<1xi32, #tpu.memory_space<smem>>, %arg2: memref<2x1024xf32, #tpu.memory_space<vmem>>, %arg3: memref<2x1024xf32, #tpu.memory_space<vmem>>) attributes {dimension_semantics = [#tpu.dimension_semantics<parallel>], iteration_bounds = array<i64: 1>, scalar_prefetch = 1 : i64, scratch_operands = 0 : i64, tpu.core_type = #tpu.core_type<tc>, window_params = [{transform_indices = @transform_0, window_bounds = array<i64: 2, 1024>}, {transform_indices = @transform_1, window_bounds = array<i64: 2, 1024>}]} {
    %c2_i32 = arith.constant 2 : i32
    %0 = arith.muli %arg0, %c2_i32 : i32
    %1 = tpu.iota {dimensions = array<i32: 0>} : vector<2x512xi32>
    %2 = vector.broadcast %0 : i32 to vector<2x512xi32>
    %3 = arith.addi %1, %2 : vector<2x512xi32>
    %4 = tpu.iota {dimensions = array<i32: 1>} : vector<2x512xi32>
    %c512_i32 = arith.constant 512 : i32
    %5 = vector.broadcast %c512_i32 : i32 to vector<2x512xi32>
    %6 = arith.muli %3, %5 : vector<2x512xi32>
    %7 = arith.addi %6, %4 : vector<2x512xi32>
    %c0 = arith.constant 0 : index
    %8 = memref.load %arg1[%c0] : memref<1xi32, #tpu.memory_space<smem>>
    %9 = vector.broadcast %8 : i32 to vector<2x512xi32>
    %10 = arith.xori %7, %9 : vector<2x512xi32>
    %11 = tpu.bitcast %10 : vector<2x512xi32> -> vector<2x512xi32>
    %c16_i32 = arith.constant 16 : i32
    %12 = vector.broadcast %c16_i32 : i32 to vector<2x512xi32>
    %13 = arith.shrui %11, %12 : vector<2x512xi32>
    %14 = arith.xori %11, %13 : vector<2x512xi32>
    %c569420461_i32 = arith.constant 569420461 : i32
    %15 = vector.broadcast %c569420461_i32 : i32 to vector<2x512xi32>
    %16 = arith.muli %14, %15 : vector<2x512xi32>
    %c15_i32 = arith.constant 15 : i32
    %17 = vector.broadcast %c15_i32 : i32 to vector<2x512xi32>
    %18 = arith.shrui %16, %17 : vector<2x512xi32>
    %19 = arith.xori %16, %18 : vector<2x512xi32>
    %c1935289751_i32 = arith.constant 1935289751 : i32
    %20 = vector.broadcast %c1935289751_i32 : i32 to vector<2x512xi32>
    %21 = arith.muli %19, %20 : vector<2x512xi32>
    %c15_i32_0 = arith.constant 15 : i32
    %22 = vector.broadcast %c15_i32_0 : i32 to vector<2x512xi32>
    %23 = arith.shrui %21, %22 : vector<2x512xi32>
    %24 = arith.xori %21, %23 : vector<2x512xi32>
    %c16_i32_1 = arith.constant 16 : i32
    %25 = vector.broadcast %c16_i32_1 : i32 to vector<2x512xi32>
    %26 = arith.shrui %24, %25 : vector<2x512xi32>
    %27 = tpu.bitcast %26 : vector<2x512xi32> -> vector<2x512xi32>
    %c65535_i32 = arith.constant 65535 : i32
    %28 = vector.broadcast %c65535_i32 : i32 to vector<2x512xi32>
    %29 = arith.andi %24, %28 : vector<2x512xi32>
    %30 = tpu.bitcast %29 : vector<2x512xi32> -> vector<2x512xi32>
    %31 = arith.sitofp %27 : vector<2x512xi32> to vector<2x512xf32>
    %cst = arith.constant 1.000000e+00 : f32
    %32 = vector.broadcast %cst : f32 to vector<2x512xf32>
    %33 = arith.addf %31, %32 : vector<2x512xf32>
    %cst_2 = arith.constant 1.52587891E-5 : f32
    %34 = vector.broadcast %cst_2 : f32 to vector<2x512xf32>
    %35 = arith.mulf %33, %34 : vector<2x512xf32>
    %36 = arith.sitofp %30 : vector<2x512xi32> to vector<2x512xf32>
    %cst_3 = arith.constant 1.52587891E-5 : f32
    %37 = vector.broadcast %cst_3 : f32 to vector<2x512xf32>
    %38 = arith.mulf %36, %37 : vector<2x512xf32>
    %39 = math.log %35 : vector<2x512xf32>
    %cst_4 = arith.constant -2.000000e+00 : f32
    %40 = vector.broadcast %cst_4 : f32 to vector<2x512xf32>
    %41 = arith.mulf %40, %39 : vector<2x512xf32>
    %42 = math.sqrt %41 : vector<2x512xf32>
    %cst_5 = arith.constant 1.000000e-01 : f32
    %43 = vector.broadcast %cst_5 : f32 to vector<2x512xf32>
    %44 = arith.mulf %43, %42 : vector<2x512xf32>
    %cst_6 = arith.constant 6.28318548 : f32
    %45 = vector.broadcast %cst_6 : f32 to vector<2x512xf32>
    %46 = arith.mulf %45, %38 : vector<2x512xf32>
    %47 = math.cos %46 : vector<2x512xf32>
    %48 = arith.mulf %47, %47 : vector<2x512xf32>
    %cst_7 = arith.constant 1.000000e+00 : f32
    %49 = vector.broadcast %cst_7 : f32 to vector<2x512xf32>
    %50 = arith.subf %49, %48 : vector<2x512xf32>
    %cst_8 = arith.constant 0.000000e+00 : f32
    %51 = vector.broadcast %cst_8 : f32 to vector<2x512xf32>
    %52 = arith.maximumf %50, %51 : vector<2x512xf32>
    %53 = math.sqrt %52 : vector<2x512xf32>
    %cst_9 = arith.constant 5.000000e-01 : f32
    %54 = vector.broadcast %cst_9 : f32 to vector<2x512xf32>
    %55 = arith.cmpf olt, %38, %54 : vector<2x512xf32>
    %cst_10 = arith.constant 0.000000e+00 : f32
    %56 = vector.broadcast %cst_10 : f32 to vector<2x512xf32>
    %57 = arith.subf %56, %53 : vector<2x512xf32>
    %58 = arith.select %55, %53, %57 : vector<2x512xi1>, vector<2x512xf32>
    %c0_11 = arith.constant 0 : index
    %c0_12 = arith.constant 0 : index
    %59 = vector.load %arg2[%c0_11, %c0_12] : memref<2x1024xf32, #tpu.memory_space<vmem>>, vector<2x512xf32>
    %c0_13 = arith.constant 0 : index
    %c512 = arith.constant 512 : index
    %60 = vector.load %arg2[%c0_13, %c512] : memref<2x1024xf32, #tpu.memory_space<vmem>>, vector<2x512xf32>
    %61 = math.sqrt %59 : vector<2x512xf32>
    %62 = arith.mulf %44, %47 : vector<2x512xf32>
    %63 = arith.mulf %61, %62 : vector<2x512xf32>
    %64 = arith.addf %59, %63 : vector<2x512xf32>
    %c0_14 = arith.constant 0 : index
    %c0_15 = arith.constant 0 : index
    %65 = vector.load %arg3[%c0_14, %c0_15] : memref<2x1024xf32, #tpu.memory_space<vmem>>, vector<2x512xf32>
    tpu.vector_store %arg3[%c0_14, %c0_15], %64 {strides = array<i32>} : memref<2x1024xf32, #tpu.memory_space<vmem>>, vector<2x512xf32>,
    %66 = math.sqrt %60 : vector<2x512xf32>
    %67 = arith.mulf %44, %58 : vector<2x512xf32>
    %68 = arith.mulf %66, %67 : vector<2x512xf32>
    %69 = arith.addf %60, %68 : vector<2x512xf32>
    %c0_16 = arith.constant 0 : index
    %c512_17 = arith.constant 512 : index
    %70 = vector.load %arg3[%c0_16, %c512_17] : memref<2x1024xf32, #tpu.memory_space<vmem>>, vector<2x512xf32>
    tpu.vector_store %arg3[%c0_16, %c512_17], %69 {strides = array<i32>} : memref<2x1024xf32, #tpu.memory_space<vmem>>, vector<2x512xf32>,
    return
  }
  func.func @transform_0(%arg0: i32, %arg1: memref<1xi32, #tpu.memory_space<smem>>) -> (i32, i32) {
    %c0_i32 = arith.constant 0 : i32
    %c0_i32_0 = arith.constant 0 : i32
    return %arg0, %c0_i32 : i32, i32
  }
  func.func @transform_1(%arg0: i32, %arg1: memref<1xi32, #tpu.memory_space<smem>>) -> (i32, i32) {
    %c0_i32 = arith.constant 0 : i32
    %c0_i32_0 = arith.constant 0 : i32
    return %arg0, %c0_i32 : i32, i32
  }
}

</mosaic_0001>

<bundles_post_ra>
// kernel: tpu_custom_call.1
= control target key start
LH: loop header
LB: loop body
LE: loop exit
PB: predicated region body
PF: predicated region fallthrough
CT: control target
= control target key end

     0   :  { %8 = vsyncpa [#allocation5], 0  ;;  %s1307_s0 = inlined_call_operand.<no memory space> [shape: s32[1], index: 0, kind: input, shape index: {}]   ;;  %s1308_s1 = inlined_call_operand.hbm [shape: f32[2,1024], index: 1, kind: input, shape index: {}]   ;;  %s1309_s2 = inlined_call_operand.hbm [shape: f32[2,1024], index: 2, kind: output, shape index: {}]  }
   0x1   :  { %9 = vsyncpa [#allocation6], 0  ;;  %s838_s9 = smov [#allocation4]   ;;  %s790_s13 = scalar_lea.hbm %s1308_s1, 256 }
   0x2   :  { %s16_s10 = sshll.u32 %s838_s9, 4  ;;  %p791_p0 = scmp.ne.s32.totalorder %s1308_s1, %s790_s13  ;;  %s17_s10 = int_to_ptr.vmem [resolvable:$true] %s16_s10 }
   0x3   :  { %p794_p1 = scmp.lt.u32.totalorder %s790_s13, %s1308_s1 }
   0x5   :  { %p796_p2 = pnand %p794_p1, %p791_p0 }
   0x7   :  { %799 = shalt.err (!%p796_p2)
}
   0x8   :  { %s800_s18 = scalar_lea.vmem %s17_s10, 256  ;;  %p805_p4 = scmp.lt.s32.totalorder %s17_s10, %s17_s10 }
   0x9   :  { %p801_p3 = scmp.ne.s32.totalorder %s17_s10, %s800_s18  ;;  %p806_p5 = scmp.lt.s32.totalorder %s800_s18, %s800_s18 }
   0xb   :  { %p807_p6 = por %p806_p5, %p805_p4 }
   0xd   :  { %p808_p7 = pnand %p807_p6, %p801_p3 }
   0xf   :  { %811 = shalt.err (!%p808_p7)
}
  0x10   :  { %19 = dma.hbm_to_vmem [thread:$0]  %s1308_s1, 256, %s17_s10, [#allocation5]  }
  0x11   :  { %834 = dma.done.wait [#allocation5], 256  }
  0x12   :  { %835 = vsyncadd [#allocation5], 4294967040  ;;  %v24_v0 = vlaneseq  ;;  %v39_v6 = vstv %s1307_s0  ;;  %s846_s0 = smov [#allocation7]  }
  0x13   :  { %s696_s1 = sshll.u32 %s846_s0, 4  ;;  %s697_s1 = int_to_ptr.vmem [resolvable:$true] %s696_s1 }
  0x14   :  { %v874_v1 = vshrl.u32 %v24_v0, 7  ;;  %v29_v2 = vand.u32 127, %v24_v0  ;;  %s812_s23 = scalar_lea.vmem %s697_s1, 256  ;;  %p817_p9 = scmp.lt.s32.totalorder %s697_s1, %s697_s1 }
  0x15   :  { %p813_p8 = scmp.ne.s32.totalorder %s697_s1, %s812_s23  ;;  %p818_p10 = scmp.lt.s32.totalorder %s812_s23, %s812_s23 }
  0x16   :  { %v30_v3 = vadd.s32 128, %v29_v2  ;;  %v31_v4 = vadd.s32 256, %v29_v2  ;;  %v33_v5 = vmul.u32 512, %v874_v1  ;;  %v32_v16 = vadd.s32 384, %v29_v2 }
  0x17   :  { %p819_p11 = por %p818_p10, %p817_p9 }
  0x18   :  { %v34_v7 = vadd.s32 %v33_v5, %v29_v2  ;;  %v35_v8 = vadd.s32 %v33_v5, %v30_v3  ;;  %v36_v9 = vadd.s32 %v33_v5, %v31_v4  ;;  %v37_v22 = vadd.s32 %v33_v5, %v32_v16 }
  0x19   :  { %p820_p12 = pnand %p819_p11, %p813_p8 }
  0x1a   :  { %v40_v10 = vxor.u32 %v39_v6, %v34_v7  ;;  %v41_v11 = vxor.u32 %v39_v6, %v35_v8  ;;  %v42_v12 = vxor.u32 %v39_v6, %v36_v9  ;;  %v43_v29 = vxor.u32 %v39_v6, %v37_v22 }
  0x1b   :  { %v839_v9 = vmov 683565275  }
  0x1c   :  { %v44_v13 = vshrl.u32 %v40_v10, 16  ;;  %v45_v14 = vshrl.u32 %v41_v11, 16  ;;  %v46_v15 = vshrl.u32 %v42_v12, 16  ;;  %v47_v36 = vshrl.u32 %v43_v29, 16 }
  0x1e   :  { %v48_v17 = vxor.u32 %v44_v13, %v40_v10  ;;  %v49_v18 = vxor.u32 %v45_v14, %v41_v11  ;;  %v50_v19 = vxor.u32 %v46_v15, %v42_v12  ;;  %v51_v42 = vxor.u32 %v47_v36, %v43_v29 }
  0x1f   :  { %v840_v11 = vmov 2475754826   ;;  %v843_v29 = vmov 920167782  }
  0x20   :  { %v52_v20 = vmul.u32 569420461, %v48_v17  ;;  %v53_v21 = vmul.u32 569420461, %v49_v18  ;;  %v841_v18 = vmov 2131351028  }
  0x21   :  { %v54_v23 = vmul.u32 569420461, %v50_v19  ;;  %v55_v47 = vmul.u32 569420461, %v51_v42 }
  0x22   :  { %v56_v24 = vshrl.u32 %v52_v20, 15  ;;  %v57_v25 = vshrl.u32 %v53_v21, 15 }
  0x23   :  { %v58_v26 = vshrl.u32 %v54_v23, 15  ;;  %v59_v52 = vshrl.u32 %v55_v47, 15 }
  0x24   :  { %v60_v27 = vxor.u32 %v56_v24, %v52_v20  ;;  %v61_v28 = vxor.u32 %v57_v25, %v53_v21  ;;  %v842_v20 = vmov 2102212464  }
  0x25   :  { %v62_v30 = vxor.u32 %v58_v26, %v54_v23  ;;  %v63_v57 = vxor.u32 %v59_v52, %v55_v47 }
  0x26   :  { %v64_v31 = vmul.u32 1935289751, %v60_v27  ;;  %v65_v32 = vmul.u32 1935289751, %v61_v28 }
  0x27   :  { %v66_v33 = vmul.u32 1935289751, %v62_v30  ;;  %v67_v62 = vmul.u32 1935289751, %v63_v57 }
  0x28   :  { %v68_v34 = vshrl.u32 %v64_v31, 15  ;;  %v69_v35 = vshrl.u32 %v65_v32, 15 }
  0x29   :  { %v70_v39 = vshrl.u32 %v66_v33, 15  ;;  %v71_v6 = vshrl.u32 %v67_v62, 15 }
  0x2a   :  { %v880_v37 = vxor.u32 %v68_v34, %v64_v31  ;;  %v882_v38 = vxor.u32 %v69_v35, %v65_v32  ;;  %v844_v32 = vmov 1326507024  }
  0x2b   :  { %v886_v44 = vxor.u32 %v70_v39, %v66_v33  ;;  %v913_v15 = vxor.u32 %v71_v6, %v67_v62 }
  0x2c   :  { %v80_v40 = vand.u32 65535, %v880_v37  ;;  %v81_v41 = vand.u32 65535, %v882_v38 }
  0x2d   :  { %v82_v49 = vand.u32 65535, %v886_v44 }
  0x2e   :  { %v96_v43 = vcvt.s32.f32 %v80_v40  ;;  %v97_v45 = vcvt.s32.f32 %v81_v41 }
  0x2f   :  { %v98_v54 = vcvt.s32.f32 %v82_v49 }
  0x30   :  { %v888_v46 = vmul.f32 1.5258789e-05, %v96_v43  ;;  %v894_v50 = vmul.f32 1.5258789e-05, %v97_v45 }
  0x31   :  { %v901_v60 = vmul.f32 1.5258789e-05, %v98_v54 }
  0x32   :  { %v891_v48 = vmul.f32 6.2831855, %v888_v46  ;;  %v898_v55 = vmul.f32 6.2831855, %v894_v50 }
  0x33   :  { %v907_v3 = vmul.f32 6.2831855, %v901_v60 }
  0x34   :  { %v155_v51 = vand.u32 2139095040, %v891_v48  ;;  %v152_v58 = vand.u32 2147483647, %v891_v48  ;;  %v258_v61 = vand.u32 2139095040, %v898_v55  ;;  %v255_v8 = vand.u32 2147483647, %v898_v55 }
  0x35   :  { %v361_v14 = vand.u32 2139095040, %v907_v3 }
  0x36   :  { %v156_v53 = vshrl.u32 %v155_v51, 23  ;;  %v159_v0 = vand.u32 8388607, %v152_v58  ;;  %v259_v4 = vshrl.u32 %v258_v61, 23  ;;  %v262_v23 = vand.u32 8388607, %v255_v8 }
  0x37   :  { %v362_v27 = vshrl.u32 %v361_v14, 23  ;;  %v83_v61 = vand.u32 65535, %v913_v15 }
  0x38   :  { %v705_v56 = vadd.s32 4294967169, %v156_v53  ;;  %v160_v7 = vor.u32 8388608, %v159_v0  ;;  %v709_v13 = vadd.s32 4294967169, %v259_v4 }
  0x39   :  { %v713_v42 = vadd.s32 4294967169, %v362_v27 }
  0x3a   :  { %v162_v59 = vadd.s32 1, %v705_v56  ;;  %v200_v22 = vshll.u32 %v160_v7, 8  ;;  %v265_v26 = vadd.s32 1, %v709_v13 }
  0x3b   :  { %v368_v7 = vadd.s32 1, %v713_v42 }
  0x3c   :  { %vm163_vm0 = vcmp.gt.s32.totalorder %v162_v59, 0  ;;  %vm266_vm5 = vcmp.gt.s32.totalorder %v265_v26, 0 }
  0x3d   :  { %v164_v63 = vsel %vm163_vm0, %v162_v59, 0  ;;  %v267_v59 = vsel %vm266_vm5, %v265_v26, 0  ;;  %vm369_vm7 = vcmp.gt.s32.totalorder %v368_v7, 0 }
  0x3e   :  { %v166_v2 = vand.u32 31, %v164_v63  ;;  %v165_v16 = vshrl.u32 %v164_v63, 5  ;;  %v269_v6 = vand.u32 31, %v267_v59  ;;  %v268_v14 = vshrl.u32 %v267_v59, 5 }
  0x3f   :  { %v370_v59 = vsel %vm369_vm7, %v368_v7, 0 }
  0x40   :  { %v167_v5 = vsub.s32 32, %v166_v2  ;;  %v169_v10 = vshll.u32 %v839_v9, %v166_v2  ;;  %v172_v17 = vshll.u32 %v840_v11, %v166_v2  ;;  %v175_v19 = vshll.u32 %v841_v18, %v166_v2 }
  0x41   :  { %v178_v21 = vshll.u32 %v842_v20, %v166_v2  ;;  %v181_v31 = vshll.u32 %v843_v29, %v166_v2  ;;  %vm184_vm1 = vcmp.lt.s32.totalorder %v165_v16, 1  ;;  %vm186_vm2 = vcmp.lt.s32.totalorder %v165_v16, 3 }
  0x42   :  { %v170_v12 = vshrl.u32 %v840_v11, %v167_v5  ;;  %v173_v25 = vshrl.u32 %v841_v18, %v167_v5  ;;  %v176_v28 = vshrl.u32 %v842_v20, %v167_v5  ;;  %v179_v30 = vshrl.u32 %v843_v29, %v167_v5 }
  0x43   :  { %v182_v33 = vshrl.u32 %v844_v32, %v167_v5  ;;  %v168_v34 = vshrl.u32 %v839_v9, %v167_v5  ;;  %vm187_vm3 = vcmp.lt.s32.totalorder %v165_v16, 4  ;;  %vm185_vm4 = vcmp.lt.s32.totalorder %v165_v16, 2 }
  0x44   :  { %v171_v24 = vor.u32 %v170_v12, %v169_v10  ;;  %v174_v35 = vor.u32 %v173_v25, %v172_v17  ;;  %v177_v36 = vor.u32 %v176_v28, %v175_v19  ;;  %v180_v39 = vor.u32 %v179_v30, %v178_v21 }
  0x45   :  { %v183_v40 = vor.u32 %v182_v33, %v181_v31  ;;  %v263_v5 = vor.u32 8388608, %v262_v23  ;;  %v99_v10 = vcvt.s32.f32 %v83_v61  ;;  %v270_v19 = vsub.s32 32, %v269_v6 }
  0x46   :  { %v192_v41 = vsel %vm184_vm1, %v171_v24, %v174_v35  ;;  %v189_v43 = vsel %vm187_vm3, %v177_v36, 2102212464  ;;  %v193_v45 = vsel %vm187_vm3, %v180_v39, 920167782  ;;  %v196_v47 = vsel %vm184_vm1, %v174_v35, %v177_v36 }
  0x47   :  { %v197_v49 = vsel %vm187_vm3, %v183_v40, 1326507024  ;;  %v188_v51 = vsel %vm184_vm1, %v168_v34, %v171_v24  ;;  %v190_v52 = vsel %vm186_vm2, %v174_v35, %v189_v43  ;;  %v194_v53 = vsel %vm186_vm2, %v177_v36, %v193_v45 }
  0x48   :  { %v198_v54 = vsel %vm186_vm2, %v180_v39, %v197_v49  ;;  %v195_v56 = vsel %vm185_vm4, %v192_v41, %v194_v53  ;;  %v191_v0 = vsel %vm185_vm4, %v188_v51, %v190_v52  ;;  %v943_v17 = vshll.u32 %v263_v5, 8 }
  0x49   :  { %v199_v57 = vsel %vm185_vm4, %v196_v47, %v198_v54  ;;  %v936_v2 = vmul.u32.u64.low %v200_v22, %v195_v56  ;;  %v937_v4 = vmul.u32.u64.high %v200_v22, %v195_v56, %v936_v2  ;;  %v207_v12 = vmul.u32 %v200_v22, %v191_v0 }
  0x4a   :  { %v932_v62 = vmul.u32.u64.low %v200_v22, %v199_v57  ;;  %v933_v63 = vmul.u32.u64.high %v200_v22, %v199_v57, %v932_v62  ;;  %v272_v16 = vshll.u32 %v839_v9, %v269_v6  ;;  %v275_v21 = vshll.u32 %v840_v11, %v269_v6 }
  0x4b   :  { %v210_v13 = vadd.s32 1, %v937_v4  ;;  %v278_v24 = vshll.u32 %v841_v18, %v269_v6  ;;  %v281_v22 = vshll.u32 %v842_v20, %v269_v6  ;;  %v284_v25 = vshll.u32 %v843_v29, %v269_v6 }
  0x4c   :  { %vm209_vm6 = vc.u32 %v933_v63, %v936_v2  ;;  %v271_v27 = vshrl.u32 %v839_v9, %v270_v19  ;;  %v273_v28 = vshrl.u32 %v840_v11, %v270_v19  ;;  %v276_v30 = vshrl.u32 %v841_v18, %v270_v19 }
  0x4d   :  { %v211_v23 = vsel %vm209_vm6, %v210_v13, %v937_v4  ;;  %v279_v31 = vshrl.u32 %v842_v20, %v270_v19  ;;  %v282_v33 = vshrl.u32 %v843_v29, %v270_v19  ;;  %v285_v34 = vshrl.u32 %v844_v32, %v270_v19 }
  0x4e   :  { %v212_v26 = vadd.s32 %v211_v23, %v207_v12  ;;  %vm287_vm8 = vcmp.lt.s32.totalorder %v268_v14, 1  ;;  %v274_v36 = vor.u32 %v273_v28, %v272_v16  ;;  %v277_v39 = vor.u32 %v276_v30, %v275_v21 }
  0x4f   :  { %vm289_vm9 = vcmp.lt.s32.totalorder %v268_v14, 3  ;;  %v280_v40 = vor.u32 %v279_v31, %v278_v24  ;;  %v283_v41 = vor.u32 %v282_v33, %v281_v22  ;;  %v286_v42 = vor.u32 %v285_v34, %v284_v25 }
  0x50   :  { %v213_v35 = vadd.s32 536870912, %v212_v26  ;;  %vm290_vm10 = vcmp.lt.s32.totalorder %v268_v14, 4  ;;  %vm288_vm11 = vcmp.lt.s32.totalorder %v268_v14, 2  ;;  %v291_v45 = vsel %vm287_vm8, %v271_v27, %v274_v36 }
  0x51   :  { %v295_v47 = vsel %vm287_vm8, %v274_v36, %v277_v39  ;;  %v292_v49 = vsel %vm290_vm10, %v280_v40, 2102212464  ;;  %v296_v51 = vsel %vm290_vm10, %v283_v41, 920167782  ;;  %v299_v52 = vsel %vm287_vm8, %v277_v39, %v280_v40 }
  0x52   :  { %v957_v43 = vshrl.u32 %v213_v35, 30  ;;  %v300_v53 = vsel %vm290_vm10, %v286_v42, 1326507024  ;;  %v293_v56 = vsel %vm289_vm9, %v277_v39, %v292_v49  ;;  %v297_v57 = vsel %vm289_vm9, %v280_v40, %v296_v51 }
  0x53   :  { %v963_v61 = vmul.f32 1.5258789e-05, %v99_v10  ;;  %v298_v62 = vsel %vm288_vm11, %v295_v47, %v297_v57  ;;  %v301_v0 = vsel %vm289_vm9, %v283_v41, %v300_v53  ;;  %v294_v6 = vsel %vm288_vm11, %v291_v45, %v293_v56 }
  0x54   :  { %v215_v54 = vshll.u32 %v957_v43, 30  ;;  %v302_v5 = vsel %vm288_vm11, %v299_v52, %v301_v0  ;;  %v372_v19 = vand.u32 31, %v370_v59  ;;  %v358_v23 = vand.u32 2147483647, %v907_v3 }
  0x55   :  { %v972_v12 = vmul.u32.u64.low %v943_v17, %v302_v5  ;;  %v973_v13 = vmul.u32.u64.high %v943_v17, %v302_v5, %v972_v12  ;;  %v977_v7 = vmul.u32.u64.low %v943_v17, %v298_v62  ;;  %v978_v10 = vmul.u32.u64.high %v943_v17, %v298_v62, %v977_v7 }
  0x56   :  { %v967_v4 = vsub.s32 %v212_v26, %v215_v54  ;;  %v982_v21 = vmul.f32 6.2831855, %v963_v61  ;;  %v373_v24 = vsub.s32 32, %v372_v19  ;;  %v310_v22 = vmul.u32 %v943_v17, %v294_v6 }
  0x57   :  { %v371_v25 = vshrl.u32 %v370_v59, 5  ;;  %v375_v26 = vshll.u32 %v839_v9, %v372_v19  ;;  %vm312_vm12 = vc.u32 %v973_v13, %v977_v7  ;;  %v378_v28 = vshll.u32 %v840_v11, %v372_v19 }
  0x58   :  { %v218_v16 = vsub.s32 0, %v967_v4  ;;  %v376_v27 = vshrl.u32 %v840_v11, %v373_v24  ;;  %v381_v30 = vshll.u32 %v841_v18, %v372_v19  ;;  %v313_v33 = vadd.s32 1, %v978_v10 }
  0x59   :  { %v379_v34 = vshrl.u32 %v841_v18, %v373_v24  ;;  %v382_v35 = vshrl.u32 %v842_v20, %v373_v24  ;;  %v365_v17 = vand.u32 8388607, %v358_v23  ;;  %v384_v36 = vshll.u32 %v842_v20, %v372_v19 }
  0x5a   :  { %v706_v14 = vmin.u32 %v218_v16, %v967_v4  ;;  %v385_v39 = vshrl.u32 %v843_v29, %v373_v24  ;;  %v314_v40 = vsel %vm312_vm12, %v313_v33, %v978_v10  ;;  %v387_v41 = vshll.u32 %v843_v29, %v372_v19 }
  0x5b   :  { %v464_v42 = vand.u32 2139095040, %v982_v21  ;;  %v315_v47 = vadd.s32 %v314_v40, %v310_v22  ;;  %v388_v51 = vshrl.u32 %v844_v32, %v373_v24  ;;  %v377_v52 = vor.u32 %v376_v27, %v375_v26 }
  0x5c   :  { %v220_v31 = vclz %v706_v14  ;;  %v386_v49 = vor.u32 %v385_v39, %v384_v36  ;;  %v380_v53 = vor.u32 %v379_v34, %v378_v28  ;;  %v383_v54 = vor.u32 %v382_v35, %v381_v30 }
  0x5d   :  { %vm393_vm13 = vcmp.lt.s32.totalorder %v371_v25, 4  ;;  %v316_v56 = vadd.s32 536870912, %v315_v47  ;;  %v366_v57 = vor.u32 8388608, %v365_v17  ;;  %vm390_vm14 = vcmp.lt.s32.totalorder %v371_v25, 1 }
  0x5e   :  { %v707_v45 = vadd.s32 4294967294, %v220_v31  ;;  %vm392_vm15 = vcmp.lt.s32.totalorder %v371_v25, 3  ;;  %v374_v59 = vshrl.u32 %v839_v9, %v373_v24  ;;  %v389_v62 = vor.u32 %v388_v51, %v387_v41 }
  0x5f   :  { %v1005_v0 = vshrl.u32 %v316_v56, 30  ;;  %v399_v5 = vsel %vm393_vm13, %v386_v49, 920167782  ;;  %v465_v6 = vshrl.u32 %v464_v42, 23  ;;  %vm391_vm1 = vcmp.lt.s32.totalorder %v371_v25, 2 }
  0x60   :  { %vm708_vm0 = vcmp.lt.s32.totalorder %v707_v45, 0  ;;  %v395_v12 = vsel %vm393_vm13, %v383_v54, 2102212464  ;;  %v398_v19 = vsel %vm390_vm14, %v377_v52, %v380_v53  ;;  %v400_v16 = vsel %vm392_vm15, %v383_v54, %v399_v5 }
  0x61   :  { %v318_v10 = vshll.u32 %v1005_v0, 30  ;;  %v402_v14 = vsel %vm390_vm14, %v380_v53, %v383_v54  ;;  %v406_v22 = vshll.u32 %v366_v57, 8  ;;  %v76_v24 = vshrl.u32 %v880_v37, 16 }
  0x62   :  { %v223_v26 = vsel %vm708_vm0, 0, %v707_v45  ;;  %v394_v27 = vsel %vm390_vm14, %v374_v59, %v377_v52  ;;  %v403_v28 = vsel %vm393_vm13, %v389_v62, 1326507024  ;;  %v396_v31 = vsel %vm392_vm15, %v380_v53, %v395_v12 }
  0x63   :  { %v319_v30 = vsub.s32 %v315_v47, %v318_v10  ;;  %v401_v33 = vsel %vm391_vm1, %v398_v19, %v400_v16  ;;  %v404_v34 = vsel %vm392_vm15, %v386_v49, %v403_v28  ;;  %v208_v35 = vadd.s32 %v936_v2, %v933_v63 }
  0x64   :  { %v224_v17 = vsub.s32 32, %v223_v26  ;;  %v405_v36 = vsel %vm391_vm1, %v402_v14, %v404_v34  ;;  %v717_v39 = vadd.s32 4294967169, %v465_v6  ;;  %v228_v37 = vsub.s32 4294967266, %v223_v26 }
  0x65   :  { %v321_v40 = vsub.s32 0, %v319_v30  ;;  %v1022_v41 = vmul.u32.u64.low %v406_v22, %v405_v36  ;;  %v1023_v42 = vmul.u32.u64.high %v406_v22, %v405_v36, %v1022_v41  ;;  %v77_v45 = vshrl.u32 %v882_v38, 16 }
  0x66   :  { %v397_v47 = vsel %vm391_vm1, %v394_v27, %v396_v31  ;;  %v1027_v51 = vmul.u32.u64.low %v406_v22, %v401_v33  ;;  %v1028_v52 = vmul.u32.u64.high %v406_v22, %v401_v33, %v1027_v51  ;;  %v78_v49 = vshrl.u32 %v886_v44, 16 }
  0x67   :  { %v79_v63 = vshrl.u32 %v913_v15, 16  ;;  %v710_v2 = vmin.u32 %v321_v40, %v319_v30  ;;  %v84_v53 = vcvt.s32.f32 %v76_v24  ;;  %v225_v54 = vshll.u32 %v967_v4, %v223_v26 }
  0x68   :  { %v226_v56 = vshrl.u32 %v208_v35, %v224_v17  ;;  %v471_v57 = vadd.s32 1, %v717_v39  ;;  %v229_v59 = vadd.s32 127, %v228_v37  ;;  %v413_v5 = vmul.u32 %v406_v22, %v397_v47 }
  0x69   :  { %v323_v62 = vclz %v710_v2  ;;  %vm415_vm2 = vc.u32 %v1023_v42, %v1027_v51  ;;  %v85_v38 = vcvt.s32.f32 %v77_v45  ;;  %v416_v25 = vadd.s32 1, %v1028_v52 }
  0x6a   :  { %vm472_vm3 = vcmp.gt.s32.totalorder %v471_v57, 0  ;;  %v86_v6 = vcvt.s32.f32 %v78_v49  ;;  %v87_v44 = vcvt.s32.f32 %v79_v63  ;;  %v88_v19 = vadd.f32 1.0, %v84_v53 }
  0x6b   :  { %v711_v12 = vadd.s32 4294967294, %v323_v62  ;;  %v473_v15 = vsel %vm472_vm3, %v471_v57, 0  ;;  %v311_v4 = vadd.s32 %v977_v7, %v973_v13  ;;  %v417_v16 = vsel %vm415_vm2, %v416_v25, %v1028_v52 }
  0x6c   :  { %v475_v10 = vand.u32 31, %v473_v15  ;;  %v227_v14 = vor.u32 %v226_v56, %v225_v54  ;;  %v230_v22 = vshll.u32 %v229_v59, 23  ;;  %v418_v24 = vadd.s32 %v417_v16, %v413_v5 }
  0x6d   :  { %vm712_vm4 = vcmp.lt.s32.totalorder %v711_v12, 0  ;;  %v461_v27 = vand.u32 2147483647, %v982_v21  ;;  %v89_v31 = vadd.f32 1.0, %v85_v38  ;;  %v90_v17 = vadd.f32 1.0, %v86_v6 }
  0x6e   :  { %v326_v26 = vsel %vm712_vm4, 0, %v711_v12  ;;  %v476_v28 = vsub.s32 32, %v475_v10  ;;  %v1041_v36 = vadd.f32 1.0, %v87_v44  ;;  %v92_v39 = vmul.f32 1.5258789e-05, %v88_v19 }
  0x6f   :  { %v327_v33 = vsub.s32 32, %v326_v26  ;;  %v328_v34 = vshll.u32 %v319_v30, %v326_v26  ;;  %v331_v35 = vsub.s32 4294967266, %v326_v26  ;;  %v419_v13 = vadd.s32 536870912, %v418_v24 }
  0x70   :  { %v231_v7 = vor.u32 4788187, %v230_v22  ;;  %v234_v37 = vcvt.s32.f32 %v227_v14  ;;  %v468_v47 = vand.u32 8388607, %v461_v27  ;;  %v478_v52 = vshll.u32 %v839_v9, %v475_v10 }
  0x71   :  { %v329_v40 = vshrl.u32 %v311_v4, %v327_v33  ;;  %v332_v41 = vadd.s32 127, %v331_v35  ;;  %v1043_v45 = vshrl.u32 %v419_v13, 30  ;;  %v479_v49 = vshrl.u32 %v840_v11, %v476_v28 }
  0x72   :  { %v481_v2 = vshll.u32 %v840_v11, %v475_v10  ;;  %v482_v53 = vshrl.u32 %v841_v18, %v476_v28  ;;  %v474_v56 = vshrl.u32 %v473_v15, 5  ;;  %v487_v57 = vshll.u32 %v842_v20, %v475_v10 }
  0x73   :  { %v330_v30 = vor.u32 %v329_v40, %v328_v34  ;;  %v333_v63 = vshll.u32 %v332_v41, 23  ;;  %v421_v54 = vshll.u32 %v1043_v45, 30  ;;  %v488_v59 = vshrl.u32 %v843_v29, %v476_v28 }
  0x74   :  { %v232_v62 = vand.u32 2147483647, %v231_v7  ;;  %v484_v38 = vshll.u32 %v841_v18, %v475_v10  ;;  %v485_v25 = vshrl.u32 %v842_v20, %v476_v28  ;;  %v93_v6 = vmul.f32 1.5258789e-05, %v89_v31 }
  0x75   :  { %v334_v5 = vor.u32 4788187, %v333_v63  ;;  %v1056_v44 = vsub.s32 %v418_v24, %v421_v54  ;;  %v469_v12 = vor.u32 8388608, %v468_v47  ;;  %v480_v11 = vor.u32 %v479_v49, %v478_v52 }
  0x76   :  { %v337_v19 = vcvt.s32.f32 %v330_v30  ;;  %v483_v4 = vor.u32 %v482_v53, %v481_v2  ;;  %v490_v16 = vshll.u32 %v843_v29, %v475_v10  ;;  %v491_v15 = vshrl.u32 %v844_v32, %v476_v28 }
  0x77   :  { %v335_v14 = vand.u32 2147483647, %v334_v5  ;;  %v424_v22 = vsub.s32 0, %v1056_v44  ;;  %v489_v26 = vor.u32 %v488_v59, %v487_v57  ;;  %vm493_vm5 = vcmp.lt.s32.totalorder %v474_v56, 1 }
  0x78   :  { %v94_v33 = vmul.f32 1.5258789e-05, %v90_v17  ;;  %v235_v18 = vmul.f32 %v234_v37, %v232_v62  ;;  %v486_v34 = vor.u32 %v485_v25, %v484_v38  ;;  %vm496_vm6 = vcmp.lt.s32.totalorder %v474_v56, 4 }
  0x79   :  { %746 = vlog2.f32 %v92_v39  ;;  %v714_v20 = vmin.u32 %v424_v22, %v1056_v44  ;;  %v477_v24 = vshrl.u32 %v839_v9, %v476_v28  ;;  %vm495_vm7 = vcmp.lt.s32.totalorder %v474_v56, 3 }
  0x7a   :  { %v492_v31 = vor.u32 %v491_v15, %v490_v16  ;;  %vm494_vm8 = vcmp.lt.s32.totalorder %v474_v56, 2  ;;  %v501_v29 = vsel %vm493_vm5, %v480_v11, %v483_v4  ;;  %v509_v32 = vshll.u32 %v469_v12, 8 }
  0x7b   :  { %v338_v10 = vmul.f32 %v337_v19, %v335_v14  ;;  %v426_v35 = vclz %v714_v20  ;;  %v498_v13 = vsel %vm496_vm6, %v486_v34, 2102212464  ;;  %v502_v17 = vsel %vm496_vm6, %v489_v26, 920167782 }
  0x7c   :  { %vm154_vm9 = vcmp.lt.s32.totalorder %v891_v48, 0  ;;  %v236_v7 = vxor.u32 2147483648, %v235_v18  ;;  %vm257_vm10 = vcmp.lt.s32.totalorder %v898_v55, 0  ;;  %v503_v39 = vsel %vm495_vm7, %v486_v34, %v502_v17 }
  0x7d   :  { %v715_v9 = vadd.s32 4294967294, %v426_v35  ;;  %v497_v28 = vsel %vm493_vm5, %v477_v24, %v480_v11  ;;  %v504_v37 = vsel %vm494_vm8, %v501_v29, %v503_v39  ;;  %v505_v40 = vsel %vm493_vm5, %v483_v4, %v486_v34 }
  0x7e   :  { %v499_v41 = vsel %vm495_vm7, %v483_v4, %v498_v13  ;;  %v506_v47 = vsel %vm496_vm6, %v492_v31, 1326507024  ;;  %v1074_v52 = vmul.u32.u64.low %v509_v32, %v504_v37  ;;  %v1075_v49 = vmul.u32.u64.high %v509_v32, %v504_v37, %v1074_v52 }
  0x7f   :  { %v339_v30 = vxor.u32 2147483648, %v338_v10  ;;  %v414_v63 = vadd.s32 %v1027_v51, %v1023_v42  ;;  %vm716_vm11 = vcmp.lt.s32.totalorder %v715_v9, 0  ;;  %v507_v2 = vsel %vm495_vm7, %v489_v26, %v506_v47 }
  0x80   :  { %vm1083_vm12 = vcmp.le.f32.partialorder %v152_v58, 0.7853982  ;;  %v237_v54 = vsel %vm154_vm9, %v236_v7, %v235_v18  ;;  %v429_v57 = vsel %vm716_vm11, 0, %v715_v9  ;;  %v508_v59 = vsel %vm494_vm8, %v505_v40, %v507_v2 }
  0x81   :  { %v430_v62 = vsub.s32 32, %v429_v57  ;;  %v431_v5 = vshll.u32 %v1056_v44, %v429_v57  ;;  %v434_v38 = vsub.s32 4294967266, %v429_v57  ;;  %v500_v42 = vsel %vm494_vm8, %v497_v28, %v499_v41 }
  0x82   :  { %v95_v51 = vmul.f32 1.5258789e-05, %v1041_v36  ;;  %vm1095_vm13 = vcmp.le.f32.partialorder %v255_v8, 0.7853982  ;;  %v1099_v25 = vmul.u32.u64.low %v509_v32, %v508_v59  ;;  %v1100_v12 = vmul.u32.u64.high %v509_v32, %v508_v59, %v1099_v25 }
  0x83   :  { %v747_v11 = vpop.eup %746  ;;  %v340_v19 = vsel %vm257_vm10, %v339_v30, %v338_v10  ;;  %v432_v4 = vshrl.u32 %v414_v63, %v430_v62  ;;  %v435_v44 = vadd.s32 127, %v434_v38  ;;  %v519_v56 = vadd.s32 1, %v1075_v49 }
  0x84   :  { %748 = vlog2.f32 %v93_v6  ;;  %v240_v36 = vsel %vm1083_vm12, %v891_v48, %v237_v54  ;;  %v516_v8 = vmul.u32 %v509_v32, %v500_v42  ;;  %v343_v14 = vsel %vm1095_vm13, %v898_v55, %v340_v19 }
  0x85   :  { %750 = vlog2.f32 %v94_v33  ;;  %v433_v16 = vor.u32 %v432_v4, %v431_v5  ;;  %v436_v15 = vshll.u32 %v435_v44, 23  ;;  %vm518_vm14 = vc.u32 %v1100_v12, %v1074_v52 }
  0x86   :  { %752 = vlog2.f32 %v95_v51  ;;  %v520_v6 = vsel %vm518_vm14, %v519_v56, %v1075_v49  ;;  %v238_v34 = vsub.s32 4, %v957_v43  ;;  %v341_v20 = vsub.s32 4, %v1005_v0 }
  0x87   :  { %754 = vcosq.f32 %v240_v36  ;;  %v437_v22 = vor.u32 4788187, %v436_v15  ;;  %v440_v26 = vcvt.s32.f32 %v433_v16  ;;  %v521_v18 = vadd.s32 %v520_v6, %v516_v8 }
  0x88   :  { %756 = vsinq.f32 %v240_v36  ;;  %vm360_vm15 = vcmp.lt.s32.totalorder %v907_v3, 0  ;;  %v239_v32 = vsel %vm154_vm9, %v238_v34, %v957_v43  ;;  %vm1124_vm0 = vcmp.le.f32.partialorder %v358_v23, 0.7853982 }
  0x89   :  { %758 = vcosq.f32 %v343_v14  ;;  %v438_v33 = vand.u32 2147483647, %v437_v22  ;;  %v522_v24 = vadd.s32 536870912, %v521_v18  ;;  %v105_v17 = vmul.f32 0.6931472, %v747_v11 }
  0x8a   :  { %760 = vsinq.f32 %v343_v14  ;;  %v342_v7 = vsel %vm257_vm10, %v341_v20, %v1005_v0  ;;  %v444_v43 = vsub.s32 4, %v1043_v45  ;;  %v241_v23 = vsel %vm1083_vm12, 0, %v239_v32 }
  0x8b   :  { %v441_v31 = vmul.f32 %v440_v26, %v438_v33  ;;  %v1117_v29 = vshrl.u32 %v522_v24, 30  ;;  %v344_v49 = vsel %vm1095_vm13, 0, %v342_v7  ;;  %v1144_v63 = vmul.f32 -2.0, %v105_v17 }
  0x8c   :  { %v245_v54 = vand.u32 3, %v241_v23  ;;  %v445_v57 = vsel %vm360_vm15, %v444_v43, %v1043_v45  ;;  %v348_v62 = vand.u32 3, %v344_v49  ;;  %v517_v16 = vadd.s32 %v1074_v52, %v1100_v12 }
  0x8d   :  { %v442_v35 = vxor.u32 2147483648, %v441_v31  ;;  %v524_v39 = vshll.u32 %v1117_v29, 30  ;;  %v447_v25 = vsel %vm1124_vm0, 0, %v445_v57  ;;  %vm244_vm8 = vweird.f32 %v891_v48 }
  0x8e   :  { %v749_v13 = vpop.eup %748  ;;  %vm250_vm1 = vcmp.eq.s32.totalorder %v245_v54, 2  ;;  %vm247_vm2 = vcmp.eq.s32.totalorder %v245_v54, 0  ;;  %vm350_vm3 = vcmp.eq.s32.totalorder %v348_v62, 0  ;;  %vm353_vm4 = vcmp.eq.s32.totalorder %v348_v62, 2 }
  0x8f   :  { %v751_v9 = vpop.eup %750  ;;  %v443_v28 = vsel %vm360_vm15, %v442_v35, %v441_v31  ;;  %v1140_v41 = vsub.s32 %v521_v18, %v524_v39  ;;  %v107_v0 = vmul.f32 0.6931472, %v749_v13  ;;  %vm246_vm5 = vcmp.lt.s32.totalorder %v245_v54, 2 }
  0x90   :  { %v753_v37 = vpop.eup %752  ;;  %v446_v40 = vsel %vm1124_vm0, %v907_v3, %v443_v28  ;;  %v109_v38 = vmul.f32 0.6931472, %v751_v9  ;;  %v451_v36 = vand.u32 3, %v447_v25  ;;  %vm349_vm6 = vcmp.lt.s32.totalorder %v348_v62, 2 }
  0x91   :  { %v755_v47 = vpop.eup %754  ;;  %762 = vcosq.f32 %v446_v40  ;;  %v527_v2 = vsub.s32 0, %v1140_v41  ;;  %v111_v42 = vmul.f32 0.6931472, %v753_v37  ;;  %v1151_v51 = vmul.f32 -2.0, %v107_v0 }
  0x92   :  { %v757_v30 = vpop.eup %756  ;;  %764 = vsinq.f32 %v446_v40  ;;  %v251_v58 = vxor.u32 2147483648, %v755_v47  ;;  %v1156_v56 = vmul.f32 -2.0, %v109_v38  ;;  %vm453_vm9 = vcmp.eq.s32.totalorder %v451_v36, 0 }
  0x93   :  { %v759_v53 = vpop.eup %758  ;;  %v718_v5 = vmin.u32 %v527_v2, %v1140_v41  ;;  %766 = vrsqrt.f32 %v1144_v63  ;;  %v248_v19 = vxor.u32 2147483648, %v757_v30  ;;  %vm456_vm10 = vcmp.eq.s32.totalorder %v451_v36, 2 }
  0x94   :  { %v761_v59 = vpop.eup %760  ;;  %v354_v44 = vxor.u32 2147483648, %v759_v53  ;;  %768 = vrsqrt.f32 %v1151_v51  ;;  %v252_v8 = vsel %vm250_vm1, %v251_v58, %v757_v30  ;;  %v1163_v32 = vmul.f32 -2.0, %v111_v42 }
  0x95   :  { %v529_v11 = vclz %v718_v5  ;;  %v351_v4 = vxor.u32 2147483648, %v761_v59  ;;  %v249_v14 = vsel %vm247_vm2, %v755_v47, %v248_v19  ;;  %770 = vrsqrt.f32 %v1156_v56 }
  0x96   :  { %v355_v26 = vsel %vm353_vm4, %v354_v44, %v761_v59  ;;  %v253_v52 = vsel %vm246_vm5, %v249_v14, %v252_v8  ;;  %vm347_vm11 = vweird.f32 %v898_v55  ;;  %vm452_vm12 = vcmp.lt.s32.totalorder %v451_v36, 2 }
  0x97   :  { %v719_v45 = vadd.s32 4294967294, %v529_v11  ;;  %v352_v22 = vsel %vm350_vm3, %v759_v53, %v351_v4  ;;  %v1171_v28 = vsel %vm244_vm8, nan, %v253_v52  ;;  %772 = vrsqrt.f32 %v1163_v32 }
  0x98   :  { %v356_v35 = vsel %vm349_vm6, %v352_v22, %v355_v26  ;;  %vm450_vm13 = vweird.f32 %v907_v3  ;;  %v564_v47 = vmul.f32 %v1171_v28, %v1171_v28  ;;  %vm1186_vm14 = vcmp.le.f32.partialorder %v461_v27, 0.7853982 }
  0x99   :  { %vm720_vm7 = vcmp.lt.s32.totalorder %v719_v45, 0  ;;  %v1174_v43 = vsel %vm347_vm11, nan, %v356_v35  ;;  %vm463_vm15 = vcmp.lt.s32.totalorder %v982_v21, 0  ;;  %vm118_vm0 = vcmp.eq.f32.partialorder %v1144_v63, inf }
  0x9a   :  { %v532_v6 = vsel %vm720_vm7, 0, %v719_v45  ;;  %v565_v0 = vmul.f32 %v1174_v43, %v1174_v43  ;;  %v547_v53 = vsub.s32 4, %v1117_v29  ;;  %v568_v54 = vsub.f32 1.0, %v564_v47  ;;  %v1213_v45 = vld [vmem:[#allocation4] sm:$0xff] }
  0x9b   :  { %v763_v15 = vpop.eup %762  ;;  %v533_v33 = vsub.s32 32, %v532_v6  ;;  %v534_v20 = vshll.u32 %v1140_v41, %v532_v6  ;;  %v537_v24 = vsub.s32 4294967266, %v532_v6  ;;  %vm120_vm1 = vcmp.eq.f32.partialorder %v1144_v63, 0.0 }
  0x9c   :  { %v765_v18 = vpop.eup %764  ;;  %v457_v34 = vxor.u32 2147483648, %v763_v15  ;;  %v569_v5 = vsub.f32 1.0, %v565_v0  ;;  %v121_v27 = vand.u32 2147483648, %v1144_v63  ;;  %vm125_vm2 = vcmp.eq.f32.partialorder %v1151_v51, inf }
  0x9d   :  { %v454_v31 = vxor.u32 2147483648, %v765_v18  ;;  %v535_v12 = vshrl.u32 %v517_v16, %v533_v33  ;;  %v538_v10 = vadd.s32 127, %v537_v24  ;;  %v767_v13 = vpop.eup %766  ;;  %vm127_vm3 = vcmp.eq.f32.partialorder %v1151_v51, 0.0 }
  0x9e   :  { %v458_v7 = vsel %vm456_vm10, %v457_v34, %v765_v18  ;;  %v769_v40 = vpop.eup %768  ;;  %v117_v30 = vmul.f32 %v767_v13, %v1144_v63  ;;  %v128_v58 = vand.u32 2147483648, %v1151_v51  ;;  %v548_v4 = vsel %vm463_vm15, %v547_v53, %v1117_v29 }
  0x9f   :  { %v455_v17 = vsel %vm453_vm9, %v763_v15, %v454_v31  ;;  %v536_v39 = vor.u32 %v535_v12, %v534_v20  ;;  %v539_v9 = vshll.u32 %v538_v10, 23  ;;  %v771_v57 = vpop.eup %770  ;;  %v124_v59 = vmul.f32 %v769_v40, %v1151_v51 }
  0xa0   :  { %v459_v55 = vsel %vm452_vm12, %v455_v17, %v458_v7  ;;  %v119_v42 = vsel %vm118_vm0, %v1144_v63, %v117_v30  ;;  %v131_v19 = vmul.f32 %v771_v57, %v1156_v56  ;;  %v1211_v44 = vmax.f32 %v568_v54, 0.0 }
  0xa1   :  { %v540_v37 = vor.u32 4788187, %v539_v9  ;;  %v543_v23 = vcvt.s32.f32 %v536_v39  ;;  %v1181_v48 = vsel %vm450_vm13, nan, %v459_v55  ;;  %v773_v11 = vpop.eup %772  ;;  %v126_v36 = vsel %vm125_vm2, %v1151_v51, %v124_v59 }
  0xa2   :  { %v566_v62 = vmul.f32 %v1181_v48, %v1181_v48  ;;  %v1216_v16 = vmax.f32 %v569_v5, 0.0  ;;  %vm132_vm4 = vcmp.eq.f32.partialorder %v1156_v56, inf  ;;  %vm134_vm5 = vcmp.eq.f32.partialorder %v1156_v56, 0.0 }
  0xa3   :  { %v541_v41 = vand.u32 2147483647, %v540_v37  ;;  %v135_v15 = vand.u32 2147483648, %v1156_v56  ;;  %v138_v14 = vmul.f32 %v773_v11, %v1163_v32  ;;  %v550_v29 = vsel %vm1186_vm14, 0, %v548_v4 }
  0xa4   :  { %v570_v8 = vsub.f32 1.0, %v566_v62  ;;  %v122_v22 = vsel %vm120_vm1, %v121_v27, %v119_v42  ;;  %v129_v26 = vsel %vm127_vm3, %v128_v58, %v126_v36  ;;  %vm139_vm6 = vcmp.eq.f32.partialorder %v1163_v32, inf }
  0xa5   :  { %v544_v49 = vmul.f32 %v543_v23, %v541_v41  ;;  %v133_v6 = vsel %vm132_vm4, %v1156_v56, %v131_v19  ;;  %v142_v34 = vand.u32 2147483648, %v1163_v32  ;;  %v554_v33 = vand.u32 3, %v550_v29  ;;  %v617_v19 = vld [vmem:[#allocation4 + $0x8] sm:$0xff] }
  0xa6   :  { %v1232_v18 = vmax.f32 %v570_v8, 0.0  ;;  %v140_v20 = vsel %vm139_vm6, %v1163_v32, %v138_v14  ;;  %vm141_vm7 = vcmp.eq.f32.partialorder %v1163_v32, 0.0  ;;  %v1238_v63 = vmul.f32 0.1, %v122_v22 }
  0xa7   :  { %v545_v3 = vxor.u32 2147483648, %v544_v49  ;;  %v136_v51 = vsel %vm134_vm5, %v135_v15, %v133_v6  ;;  %v1242_v24 = vmul.f32 0.1, %v129_v26  ;;  %v845_v31 = vmov 1983009808  }
  0xa8   :  { %v636_v52 = vunpack.c.l.s4 %v845_v31  ;;  %v143_v10 = vsel %vm141_vm7, %v142_v34, %v140_v20  ;;  %vm559_vm8 = vcmp.eq.s32.totalorder %v554_v33, 2  ;;  %v1245_v13 = vmul.f32 0.1, %v136_v51 }
  0xa9   :  { %v546_v38 = vsel %vm463_vm15, %v545_v3, %v544_v49  ;;  %vm556_vm9 = vcmp.eq.s32.totalorder %v554_v33, 0  ;;  %v625_v32 = vmul.f32 %v1171_v28, %v1238_v63  ;;  %vm555_vm10 = vcmp.lt.s32.totalorder %v554_v33, 2 }
  0xaa   :  { %v549_v25 = vsel %vm1186_vm14, %v982_v21, %v546_v38  ;;  %v626_v7 = vmul.f32 %v1174_v43, %v1242_v24  ;;  %v637_v39 = vunpack.c.0.s8 %v636_v52  ;;  %v1251_v37 = vmul.f32 0.1, %v143_v10 }
  0xab   :  { %774 = vcosq.f32 %v549_v25  ;;  %vm553_vm11 = vweird.f32 %v982_v21  ;;  %v627_v0 = vmul.f32 %v1181_v48, %v1245_v13  ;;  %vm620_vm12 = vcmp.eq.f32.partialorder %v1213_v45, inf }
  0xac   :  { %776 = vsinq.f32 %v549_v25  ;;  %v633_v30 = vcombine.low %v625_v32, %v626_v7  ;;  %v1258_v43 = vsub.s32 %v637_v39, %v874_v1  ;;  %v623_v54 = vand.u32 2147483648, %v1213_v45 }
  0xad   :  { %778 = vrsqrt.f32 %v1213_v45  ;;  %vm578_vm13 = vcmp.eq.f32.partialorder %v1211_v44, inf  ;;  %vm585_vm14 = vcmp.eq.f32.partialorder %v1216_v16, inf  ;;  %vm580_vm15 = vcmp.eq.f32.partialorder %v1211_v44, 0.0 }
  0xae   :  { %780 = vrsqrt.f32 %v1211_v44  ;;  %vm622_vm0 = vcmp.eq.f32.partialorder %v1213_v45, 0.0  ;;  %v641_v62 = vrot.slane %v633_v30, %v1258_v43  ;;  %v581_v27 = vand.u32 2147483648, %v1211_v44 }
  0xaf   :  { %782 = vrsqrt.f32 %v1216_v16  ;;  %v588_v38 = vand.u32 2147483648, %v1216_v16  ;;  %vm587_vm1 = vcmp.eq.f32.partialorder %v1216_v16, 0.0  ;;  %vm592_vm2 = vcmp.eq.f32.partialorder %v1232_v18, inf }
  0xb0   :  { %784 = vrsqrt.f32 %v1232_v18  ;;  %v595_v14 = vand.u32 2147483648, %v1232_v18  ;;  %vm594_vm3 = vcmp.eq.f32.partialorder %v1232_v18, 0.0  ;;  %vm604_vm4 = vcmp.lt.f32.partialorder %v888_v46, 0.5 }
  0xb1   :  { %vm605_vm5 = vcmp.lt.f32.partialorder %v894_v50, 0.5  ;;  %vm606_vm7 = vcmp.lt.f32.partialorder %v901_v60, 0.5  ;;  %v659_v39 = vand.u32 2147483648, %v617_v19 }
  0xb5   :  { %v775_v12 = vpop.eup %774 }
  0xb6   :  { %v777_v35 = vpop.eup %776  ;;  %v560_v17 = vxor.u32 2147483648, %v775_v12 }
  0xb7   :  { %v557_v56 = vxor.u32 2147483648, %v777_v35  ;;  %v779_v9 = vpop.eup %778 }
  0xb8   :  { %v561_v23 = vsel %vm559_vm8, %v560_v17, %v777_v35  ;;  %v781_v40 = vpop.eup %780  ;;  %v619_v49 = vmul.f32 %v779_v9, %v1213_v45 }
  0xb9   :  { %v558_v55 = vsel %vm556_vm9, %v775_v12, %v557_v56  ;;  %v783_v41 = vpop.eup %782  ;;  %v577_v3 = vmul.f32 %v781_v40, %v1211_v44  ;;  %vm607_vm9 = vcmp.lt.f32.partialorder %v963_v61, 0.5 }
  0xba   :  { %v562_v47 = vsel %vm555_vm10, %v558_v55, %v561_v23  ;;  %v584_v53 = vmul.f32 %v783_v41, %v1216_v16  ;;  %v785_v57 = vpop.eup %784  ;;  %v621_v1 = vsel %vm620_vm12, %v1213_v45, %v619_v49  ;;  %vm656_vm10 = vcmp.eq.f32.partialorder %v617_v19, inf }
  0xbb   :  { %v563_v28 = vsel %vm553_vm11, nan, %v562_v47  ;;  %v579_v58 = vsel %vm578_vm13, %v1211_v44, %v577_v3  ;;  %v591_v11 = vmul.f32 %v785_v57, %v1232_v18  ;;  %v624_v4 = vsel %vm622_vm0, %v623_v54, %v621_v1 }
  0xbc   :  { %v567_v2 = vmul.f32 %v563_v28, %v563_v28  ;;  %v628_v21 = vmul.f32 %v563_v28, %v1251_v37  ;;  %v586_v25 = vsel %vm585_vm14, %v1216_v16, %v584_v53  ;;  %v582_v8 = vsel %vm580_vm15, %v581_v27, %v579_v58 }
  0xbd   :  { %v589_v15 = vsel %vm587_vm1, %v588_v38, %v586_v25  ;;  %v593_v29 = vsel %vm592_vm2, %v1232_v18, %v591_v11  ;;  %v608_v16 = vsub.f32 0.0, %v582_v8  ;;  %vm658_vm11 = vcmp.eq.f32.partialorder %v617_v19, 0.0 }
  0xbe   :  { %v571_v48 = vsub.f32 1.0, %v567_v2  ;;  %v634_v59 = vcombine.low %v627_v0, %v628_v21  ;;  %v609_v26 = vsub.f32 0.0, %v589_v15  ;;  %v596_v34 = vsel %vm594_vm3, %v595_v14, %v593_v29 }
  0xbf   :  { %v610_v44 = vsub.f32 0.0, %v596_v34  ;;  %v612_v33 = vsel %vm604_vm4, %v582_v8, %v608_v16 }
  0xc0   :  { %v575_v5 = vmax.f32 %v571_v48, 0.0  ;;  %v648_v42 = vrot.slane %v634_v59, %v1258_v43  ;;  %v613_v20 = vsel %vm605_vm5, %v589_v15, %v609_v26  ;;  %v661_v52 = vmul.f32 %v612_v33, %v1238_v63 }
  0xc1   :  { %v614_v46 = vsel %vm606_vm7, %v596_v34, %v610_v44 }
  0xc2   :  { %786 = vrsqrt.f32 %v575_v5  ;;  %v649_v36 = vcombine.low %v641_v62, %v648_v42  ;;  %vm599_vm6 = vcmp.eq.f32.partialorder %v575_v5, inf  ;;  %v602_v31 = vand.u32 2147483648, %v575_v5 }
  0xc3   :  { %788 = vrsqrt.f32 %v617_v19  ;;  %vm601_vm8 = vcmp.eq.f32.partialorder %v575_v5, 0.0  ;;  %v663_v32 = vmul.f32 %v614_v46, %v1245_v13 }
  0xc4   :  { %v651_v22 = vmul.f32 %v649_v36, %v624_v4 }
  0xc6   :  { %v652_v6 = vadd.f32 %v651_v22, %v1213_v45  ;;  %v662_v45 = vmul.f32 %v613_v20, %v1242_v24 }
  0xc8   :  { %653 = vst [vmem:[#allocation7] sm:$0xff] %v652_v6  ;;  %v669_v56 = vcombine.low %v661_v52, %v662_v45 }
  0xca   :  { %v677_v24 = vrot.slane %v669_v56, %v1258_v43 }
  0xcc   :  { %v787_v51 = vpop.eup %786 }
  0xcd   :  { %v598_v18 = vmul.f32 %v787_v51, %v575_v5  ;;  %v789_v12 = vpop.eup %788 }
  0xce   :  { %v655_v17 = vmul.f32 %v789_v12, %v617_v19 }
  0xcf   :  { %v600_v10 = vsel %vm599_vm6, %v575_v5, %v598_v18 }
  0xd0   :  { %v603_v35 = vsel %vm601_vm8, %v602_v31, %v600_v10  ;;  %v657_v9 = vsel %vm656_vm10, %v617_v19, %v655_v17 }
  0xd1   :  { %v611_v50 = vsub.f32 0.0, %v603_v35  ;;  %v660_v40 = vsel %vm658_vm11, %v659_v39, %v657_v9 }
  0xd3   :  { %v615_v7 = vsel %vm607_vm9, %v603_v35, %v611_v50 }
  0xd4   :  { %v664_v60 = vmul.f32 %v615_v7, %v1251_v37 }
  0xd6   :  { %v670_v63 = vcombine.low %v663_v32, %v664_v60 }
  0xd8   :  { %v684_v23 = vrot.slane %v670_v63, %v1258_v43 }
  0xda   :  { %v685_v55 = vcombine.low %v677_v24, %v684_v23 }
  0xdc   :  { %v687_v61 = vmul.f32 %v685_v55, %v660_v40 }
  0xde   :  { %v688_v41 = vadd.f32 %v687_v61, %v617_v19 }
  0xe0   :  { %689 = vst [vmem:[#allocation7 + $0x8] sm:$0xff] %v688_v41 }
  0xe1   :  { %823 = shalt.err (!%p820_p12)
}
  0xe2   :  { %s824_s26 = scalar_lea.hbm %s1309_s2, 256 }
  0xe3   :  { %p825_p13 = scmp.ne.s32.totalorder %s1309_s2, %s824_s26  ;;  %p828_p0 = scmp.lt.u32.totalorder %s824_s26, %s1309_s2 }
  0xe5   :  { %p830_p1 = pnand %p828_p0, %p825_p13 }
  0xe7   :  { %833 = shalt.err (!%p830_p1)
}
  0xe8   :  { %699 = dma.vmem_to_hbm [thread:$0]  %s697_s1, 256, %s1309_s2, [#allocation6]  }
  0xe9   :  { %836 = dma.done.wait [#allocation6], 256  }
  0xea   :  { %837 = vsyncadd [#allocation6], 4294967040 }
  0xeb   :  { %703 = vsyncpa [#allocation5], 1 }
  0xec   :  { %704 = vsyncpa [#allocation6], 1 }

</bundles_post_ra>
